<compile_context>
chip_gen: v6e
topology: v6e:2x2x1
jax: 0.10.0
libtpu: 0.0.40
codegen_flags: <defaults>
</compile_context>

<pallas_src>
import functools

import jax
import jax.numpy as jnp
from jax.experimental import pallas as pl
from jax.experimental.pallas import tpu as pltpu

_LANE = 128
_SUBLANE = 8


def _round_up(x, m):
    return ((x + m - 1) // m) * m


def _round_down(x, m):
    return (x // m) * m


# --------------------------------------------------------------------------- #
# Kernels
# --------------------------------------------------------------------------- #
def _combiner_packed_kernel(x_ref, w_ref, b_ref, o_ref, *, groups, d):
    # x_ref: (TR, 128) VMEM -- each row packs `groups` original rows of length d.
    # w_ref: (1, 128) VMEM  -- weight tiled `groups` times (resident block).
    # b_ref: (1,)   SMEM    -- scalar bias.
    # o_ref: (TR, groups) VMEM -- one fc1 output per packed original row.
    prod = x_ref[...] * w_ref[...]                     # VPU, full 128-lane utilization
    parts = [
        jnp.sum(prod[:, g * d:(g + 1) * d], axis=-1, keepdims=True)   # XLU reduce
        for g in range(groups)
    ]
    y = jnp.concatenate(parts, axis=-1) + b_ref[0]     # (TR, groups)
    # leaky_relu, PyTorch default negative_slope = 0.01
    o_ref[...] = jnp.where(y > 0, y, 0.01 * y).astype(o_ref.dtype)


def _combiner_rowsum_kernel(x_ref, w_ref, b_ref, o_ref):
    # Generic path: x_ref (TB, D), w_ref (1, D), b_ref (1,) SMEM, o_ref (TB, 1).
    y = jnp.sum(x_ref[...] * w_ref[...], axis=-1, keepdims=True) + b_ref[0]
    o_ref[...] = jnp.where(y > 0, y, 0.01 * y).astype(o_ref.dtype)


# --------------------------------------------------------------------------- #
# Tiling / VMEM budgeting
# --------------------------------------------------------------------------- #
def _pick_tile_rows(total_rows, x_lanes, out_lanes, *, budget_bytes,
                    target_x_tile_bytes=4 << 20, floor_x_tile_bytes=1 << 20,
                    min_steps=8):
    """Rows per grid step, sized by bytes (lane-padded VMEM accounting)."""
    if total_rows < _SUBLANE:
        return total_rows                                   # exact, full-dim block
    x_row = _round_up(x_lanes, _LANE) * 4                   # VMEM bytes / x row
    o_row = _round_up(out_lanes, _LANE) * 4                 # VMEM bytes / out row
    # ~4 MiB of x per buffer amortizes the ~0.35 us per-grid-step overhead.
    tr = max(_SUBLANE, _round_down(target_x_tile_bytes // x_row, _SUBLANE))
    # Keep 2x x-buffers + 2x out-buffers inside the overall VMEM budget.
    tr_budget = _round_down(budget_bytes // (2 * (x_row + o_row)), _SUBLANE)
    tr = max(_SUBLANE, min(tr, tr_budget))
    # Enough grid steps for v7x 2-TC sharding + pipelining, but never shrink
    # the x tile below ~1 MiB.
    tr_steps = _round_up(-(-total_rows // min_steps), _SUBLANE)
    tr_floor = max(_SUBLANE, _round_down(floor_x_tile_bytes // x_row, _SUBLANE))
    tr = min(tr, max(tr_steps, tr_floor))
    return max(_SUBLANE, min(tr, _round_up(total_rows, _SUBLANE)))


def _vmem_need_bytes(tile_rows, x_lanes, out_lanes, w_lanes):
    rows = max(tile_rows, _SUBLANE)
    x_buf = rows * _round_up(x_lanes, _LANE) * 4
    o_buf = rows * _round_up(out_lanes, _LANE) * 4
    w_buf = _SUBLANE * _round_up(w_lanes, _LANE) * 4
    return 2 * (x_buf + o_buf + w_buf)                      # double-buffered


# --------------------------------------------------------------------------- #
# Wrapper
# --------------------------------------------------------------------------- #
def combiner_model_2(x, weight, bias, *, tile_rows=None, vmem_budget_bytes=24 << 20):
    """x: (B, D) f32, weight: (1, D) f32, bias: (1,) f32 -> (B, 1) f32."""
    B, D = x.shape
    assert weight.shape == (1, D) and bias.shape == (1,)
    x = x.astype(jnp.float32)
    weight = weight.astype(jnp.float32)
    bias = bias.astype(jnp.float32)

    groups = _LANE // D if (0 < D < _LANE and _LANE % D == 0) else 1
    packed = groups > 1 and (B % groups == 0)
    # TODO(synk): when B % (128 // D) != 0 the small-D lane-packing fast path is
    # skipped (handling the tail rows would require an extra pad/copy of x).

    if packed:
        rows, x_lanes, out_lanes = B // groups, _LANE, groups
        x_in = x.reshape(rows, _LANE)                # free, contiguous reshape
        w_in = jnp.tile(weight, (1, groups))         # (1, 128), tiny
        kernel = functools.partial(_combiner_packed_kernel, groups=groups, d=D)
    else:
        rows, x_lanes, out_lanes = B, D, 1
        x_in = x
        w_in = weight
        kernel = _combiner_rowsum_kernel

    if tile_rows is None:
        tr = _pick_tile_rows(rows, x_lanes, out_lanes, budget_bytes=vmem_budget_bytes)
    else:
        tr = max(1, min(int(tile_rows), rows))
        if rows < _SUBLANE:
            tr = rows
        else:
            tr = max(_SUBLANE, _round_down(tr, _SUBLANE))

    grid = (pl.cdiv(rows, tr),)

    need = _vmem_need_bytes(tr, x_lanes, out_lanes, x_lanes)
    vmem_limit = int(max(16 << 20, need + (4 << 20)))

    out = pl.pallas_call(
        kernel,
        out_shape=jax.ShapeDtypeStruct((rows, out_lanes), jnp.float32),
        grid=grid,
        in_specs=[
            pl.BlockSpec((tr, x_lanes), lambda i: (i, 0)),          # streamed x tiles
            pl.BlockSpec((1, x_lanes), lambda i: (0, 0)),           # resident weight
            pl.BlockSpec(memory_space=pltpu.MemorySpace.SMEM),      # scalar bias
        ],
        out_specs=pl.BlockSpec((tr, out_lanes), lambda i: (i, 0)),
        compiler_params=pltpu.CompilerParams(
            dimension_semantics=("parallel",),
            vmem_limit_bytes=vmem_limit,
        ),
        cost_estimate=pl.CostEstimate(
            flops=2 * B * D,
            transcendentals=0,
            bytes_accessed=4 * (B * D + D + B),
        ),
    )(x_in, w_in, bias)

    return out.reshape(B, 1) if packed else out


def reference(x, weight, bias):
    y = x @ weight.T + bias
    return jnp.where(y > 0, y, 0.01 * y)


if __name__ == "__main__":
    key = jax.random.PRNGKey(0)
    kx, kw, kb, kx2, kx3 = jax.random.split(key, 5)

    batch, input_size = 8, 32
    x = jax.random.normal(kx, (batch, input_size), dtype=jnp.float32)

    # Deterministic param init matching the module's __init__:
    # fc1.weight ~ U(-0.1, 0.1), shape (1, input_size)
    weight = jax.random.uniform(kw, (1, input_size), dtype=jnp.float32,
                                minval=-0.1, maxval=0.1)
    # fc1.bias default torch init: U(-1/sqrt(in), 1/sqrt(in))
    bound = 1.0 / (input_size ** 0.5)
    bias = jax.random.uniform(kb, (1,), dtype=jnp.float32,
                              minval=-bound, maxval=bound)

    # Small demo shape: packed fast path, single grid step.
    out = jax.block_until_ready(combiner_model_2(x, weight, bias))
    ref = reference(x, weight, bias)
    assert out.shape == (batch, 1)
    assert jnp.allclose(out, ref, atol=1e-5, rtol=1e-5)

    # Packed fast path with >1 grid step and a partial (edge-masked) last block.
    x2 = jax.random.normal(kx2, (40, input_size), dtype=jnp.float32)
    out2 = jax.block_until_ready(combiner_model_2(x2, weight, bias, tile_rows=8))
    assert out2.shape == (40, 1)
    assert jnp.allclose(out2, reference(x2, weight, bias), atol=1e-5, rtol=1e-5)

    # Generic (unpacked) path: batch not divisible by 128 // D.
    x3 = jax.random.normal(kx3, (6, input_size), dtype=jnp.float32)
    out3 = jax.block_until_ready(combiner_model_2(x3, weight, bias))
    assert out3.shape == (6, 1)
    assert jnp.allclose(out3, reference(x3, weight, bias), atol=1e-5, rtol=1e-5)

    print("KERNEL_OK")
</pallas_src>

<mosaic_0001>
module attributes {stable_mosaic.version = 11 : i64} {
  func.func @_combiner_packed_kernel(%arg0: i32, %arg1: memref<2x128xf32, #tpu.memory_space<vmem>>, %arg2: memref<1x128xf32, #tpu.memory_space<vmem>>, %arg3: memref<1xf32, #tpu.memory_space<smem>>, %arg4: memref<2x4xf32, #tpu.memory_space<vmem>>) attributes {dimension_semantics = [#tpu.dimension_semantics<parallel>], iteration_bounds = array<i64: 1>, scalar_prefetch = 0 : i64, scratch_operands = 0 : i64, tpu.core_type = #tpu.core_type<tc>, window_params = [{transform_indices = @transform_0, window_bounds = array<i64: 2, 128>}, {pipeline_mode = #tpu.pipeline_mode<synchronous>, transform_indices = @transform_1, window_bounds = array<i64: 1, 128>}, {transform_indices = @transform_2, window_bounds = array<i64: 1>}, {transform_indices = @transform_3, window_bounds = array<i64: 2, 4>}]} {
    %c0 = arith.constant 0 : index
    %c0_0 = arith.constant 0 : index
    %0 = vector.load %arg1[%c0, %c0_0] : memref<2x128xf32, #tpu.memory_space<vmem>>, vector<2x128xf32>
    %c0_1 = arith.constant 0 : index
    %c0_2 = arith.constant 0 : index
    %1 = vector.load %arg2[%c0_1, %c0_2] : memref<1x128xf32, #tpu.memory_space<vmem>>, vector<1x128xf32>
    %2 = vector.broadcast %1 : vector<1x128xf32> to vector<2x128xf32>
    %3 = arith.mulf %0, %2 : vector<2x128xf32>
    %4 = vector.extract_strided_slice %3 {offsets = [0, 0], sizes = [2, 32], strides = [1, 1]} : vector<2x128xf32> to vector<2x32xf32>
    %cst = arith.constant dense<0.000000e+00> : vector<2xf32>
    %5 = vector.multi_reduction <add>, %4, %cst [1] : vector<2x32xf32> to vector<2xf32>
    %6 = vector.shape_cast %5 : vector<2xf32> to vector<2x1xf32>
    %7 = vector.extract_strided_slice %3 {offsets = [0, 32], sizes = [2, 32], strides = [1, 1]} : vector<2x128xf32> to vector<2x32xf32>
    %cst_3 = arith.constant dense<0.000000e+00> : vector<2xf32>
    %8 = vector.multi_reduction <add>, %7, %cst_3 [1] : vector<2x32xf32> to vector<2xf32>
    %9 = vector.shape_cast %8 : vector<2xf32> to vector<2x1xf32>
    %10 = vector.extract_strided_slice %3 {offsets = [0, 64], sizes = [2, 32], strides = [1, 1]} : vector<2x128xf32> to vector<2x32xf32>
    %cst_4 = arith.constant dense<0.000000e+00> : vector<2xf32>
    %11 = vector.multi_reduction <add>, %10, %cst_4 [1] : vector<2x32xf32> to vector<2xf32>
    %12 = vector.shape_cast %11 : vector<2xf32> to vector<2x1xf32>
    %13 = vector.extract_strided_slice %3 {offsets = [0, 96], sizes = [2, 32], strides = [1, 1]} : vector<2x128xf32> to vector<2x32xf32>
    %cst_5 = arith.constant dense<0.000000e+00> : vector<2xf32>
    %14 = vector.multi_reduction <add>, %13, %cst_5 [1] : vector<2x32xf32> to vector<2xf32>
    %15 = vector.shape_cast %14 : vector<2xf32> to vector<2x1xf32>
    %16 = tpu.concatenate %6, %9, %12, %15 in 1 : vector<2x1xf32>, vector<2x1xf32>, vector<2x1xf32>, vector<2x1xf32> -> vector<2x4xf32>
    %c0_6 = arith.constant 0 : index
    %17 = memref.load %arg3[%c0_6] : memref<1xf32, #tpu.memory_space<smem>>
    %18 = vector.broadcast %17 : f32 to vector<2x4xf32>
    %19 = arith.addf %16, %18 : vector<2x4xf32>
    %cst_7 = arith.constant 0.000000e+00 : f32
    %20 = vector.broadcast %cst_7 : f32 to vector<2x4xf32>
    %21 = arith.cmpf ogt, %19, %20 : vector<2x4xf32>
    %cst_8 = arith.constant 0.00999999977 : f32
    %22 = vector.broadcast %cst_8 : f32 to vector<2x4xf32>
    %23 = arith.mulf %22, %19 : vector<2x4xf32>
    %24 = arith.select %21, %19, %23 : vector<2x4xi1>, vector<2x4xf32>
    %c0_9 = arith.constant 0 : index
    %c0_10 = arith.constant 0 : index
    %25 = vector.load %arg4[%c0_9, %c0_10] : memref<2x4xf32, #tpu.memory_space<vmem>>, vector<2x4xf32>
    tpu.vector_store %arg4[%c0_9, %c0_10], %24 {strides = array<i32>} : memref<2x4xf32, #tpu.memory_space<vmem>>, vector<2x4xf32>,
    return
  }
  func.func @transform_0(%arg0: i32) -> (i32, i32) {
    %c0_i32 = arith.constant 0 : i32
    %c0_i32_0 = arith.constant 0 : i32
    return %arg0, %c0_i32 : i32, i32
  }
  func.func @transform_1(%arg0: i32) -> (i32, i32) {
    %c0_i32 = arith.constant 0 : i32
    %c0_i32_0 = arith.constant 0 : i32
    %c0_i32_1 = arith.constant 0 : i32
    return %c0_i32, %c0_i32_0 : i32, i32
  }
  func.func @transform_2(%arg0: i32) -> i32 {
    %c0_i32 = arith.constant 0 : i32
    %c0_i32_0 = arith.constant 0 : i32
    return %c0_i32 : i32
  }
  func.func @transform_3(%arg0: i32) -> (i32, i32) {
    %c0_i32 = arith.constant 0 : i32
    %c0_i32_0 = arith.constant 0 : i32
    return %arg0, %c0_i32 : i32, i32
  }
}

</mosaic_0001>

<bundles_post_ra>
// kernel: tpu_custom_call.1
= control target key start
LH: loop header
LB: loop body
LE: loop exit
PB: predicated region body
PF: predicated region fallthrough
CT: control target
= control target key end

     0   :  { %s139_s0 = inlined_call_operand.vmem [shape: f32[2,128], index: 0, kind: input, shape index: {}]   ;;  %s140_s1 = inlined_call_operand.vmem [shape: f32[1,128], index: 1, kind: input, shape index: {}]   ;;  %s141_s2 = inlined_call_operand.<no memory space> [shape: f32[1], index: 2, kind: input, shape index: {}]   ;;  %s142_s3 = inlined_call_operand.hbm [shape: f32[2,4], index: 3, kind: output, shape index: {}]  }
   0x1   :  { %v16_v0 = vld [vmem:[%s139_s0] sm:$0x3] }
   0x2   :  { %v76_v1 = vld [vmem:[%s140_s1] ss:$0 sm:$0xff] }
   0x3   :  { %v24_v2 = vmul.f32 %v76_v1, %v16_v0 }
   0x4   :  { %9 = vsyncpa [#allocation4], 0  ;;  %s103_s16 = smov 96   ;;  %s104_s17 = smov 32   ;;  %vm25_vm0 = vcmask 254976   ;;  %vm48_vm1 = vcmask 7168   ;;  %v55_v15 = vstv %s141_s2 }
   0x5   :  { %30 = vrot.lane.b32.xlu0 %v24_v2, %s103_s16  ;;  %42 = vrot.lane.b32.xlu1 %v24_v2, %s104_s17  ;;  %s105_s18 = smov 64   ;;  %v26_v3 = vsel %vm25_vm0, %v24_v2, 0.0  ;;  %vm50_vm2 = vcmask 15360   ;;  %vm52_vm3 = vcmask 23552   ;;  %s106_s19 = smov [#allocation3]   ;;  %vm60_vm5 = vcmask 25600  }
   0x6   :  { %s68_s20 = sshll.u32 %s106_s19, 4  ;;  %s69_s20 = int_to_ptr.vmem [resolvable:$true] %s68_s20 }
   0x7   :  { %s81_s21 = scalar_lea.vmem %s69_s20, 32  ;;  %p86_p1 = scmp.lt.s32.totalorder %s69_s20, %s69_s20 }
   0x8   :  { %p82_p0 = scmp.ne.s32.totalorder %s69_s20, %s81_s21  ;;  %p87_p2 = scmp.lt.s32.totalorder %s81_s21, %s81_s21 }
   0x9   :  { %36 = vrot.lane.b32.xlu0 %v24_v2, %s105_s18 }
   0xa   :  { %p88_p3 = por %p87_p2, %p86_p1 }
   0xc   :  { %p89_p4 = pnand %p88_p3, %p82_p0 }
  0x29   :  { %27 = vadd.xlane.f32.xlu1 %v26_v3 }
  0x77   :  { %v31_v4 = vpop.permute.xlu0 %30  ;;  %v43_v5 = vpop.permute.xlu1 %42 }
  0x78   :  { %v33_v6 = vsel %vm25_vm0, %v31_v4, 0.0  ;;  %v45_v7 = vsel %vm25_vm0, %v43_v5, 0.0 }
  0x79   :  { %34 = vadd.xlane.f32.xlu0 %v33_v6  ;;  %46 = vadd.xlane.f32.xlu1 %v45_v7 }
  0x7b   :  { %v37_v8 = vpop.permute.xlu0 %36 }
  0x7c   :  { %v39_v9 = vsel %vm25_vm0, %v37_v8, 0.0 }
  0x7d   :  { %40 = vadd.xlane.f32.xlu0 %v39_v9 }
  0xb2   :  { %v28_v10 = vpop.xlane.xlu1 %27 }
 0x102   :  { %v35_v11 = vpop.xlane.xlu0 %34  ;;  %v47_v12 = vpop.xlane.xlu1 %46 }
 0x103   :  { %v49_v13 = vsel %vm48_vm1, %v28_v10, %v35_v11 }
 0x106   :  { %v41_v14 = vpop.xlane.xlu0 %40 }
 0x107   :  { %v51_v16 = vsel %vm50_vm2, %v49_v13, %v41_v14 }
 0x108   :  { %v53_v17 = vsel %vm52_vm3, %v51_v16, %v47_v12 }
 0x109   :  { %v56_v18 = vadd.f32 %v55_v15, %v53_v17 }
 0x10b   :  { %vm57_vm4 = vcmp.gt.f32.partialorder %v56_v18, 0.0  ;;  %v58_v19 = vmul.f32 0.01, %v56_v18 }
 0x10d   :  { %v59_v20 = vsel %vm57_vm4, %v56_v18, %v58_v19 }
 0x10e   :  { %61 = vst.msk [vmem:[#allocation3] sm:$0x3] %vm60_vm5, %v59_v20 }
 0x10f   :  { %92 = shalt.err (!%p89_p4)
}
 0x110   :  { %71 = dma.vmem_to_hbm [thread:$0]  %s69_s20, 32, %s142_s3, [#allocation4]  }
 0x111   :  { %101 = dma.done.wait [#allocation4], 32  }
 0x112   :  { %102 = vsyncadd [#allocation4], 4294967264 }
 0x113   :  { %75 = vsyncpa [#allocation4], 1 }

</bundles_post_ra>
